<compile_context>
chip_gen: v6e
topology: v6e:2x2x1
jax: 0.10.0
libtpu: 0.0.40
codegen_flags: <defaults>
</compile_context>

<pallas_src>
import jax
import jax.numpy as jnp
from jax.experimental import pallas as pl
from jax.experimental.pallas import tpu as pltpu

_LANE = 128
_SUBLANE = 8


def _round_up(x: int, m: int) -> int:
    return (x + m - 1) // m * m


def mlp_kernel(x_ref, w1_ref, b1_ref, w2_ref, b2_ref, o_ref):
    # fc1: (tm, in) @ (in, Hp) + (1, Hp), f32 accumulation on the MXU.
    h = jnp.dot(x_ref[...], w1_ref[...], preferred_element_type=jnp.float32)
    h = jnp.maximum(h + b1_ref[...], 0.0)  # bias + ReLU on the VPU, in f32
    # fc2: (tm, Hp) @ (Hp, Cp) + (1, Cp). Keep the f32 accumulator between layers.
    out = jnp.dot(h, w2_ref[...], preferred_element_type=jnp.float32)
    o_ref[...] = (out + b2_ref[...]).astype(o_ref.dtype)


def pad_params(w1, b1, w2, b2):
    """Lane-pad weights/biases to multiples of 128 ONCE; reuse across all forwards.

    Zero padding is exact: padded hidden columns are 0 -> relu(0)=0 -> contribute
    nothing to fc2; padded class columns are sliced away after the kernel.
    """
    in_size, hidden = w1.shape
    num_classes = w2.shape[1]
    hp = _round_up(hidden, _LANE)
    cp = _round_up(num_classes, _LANE)
    w1p = jnp.zeros((in_size, hp), w1.dtype).at[:, :hidden].set(w1)
    b1p = jnp.zeros((1, hp), b1.dtype).at[:, :hidden].set(b1.reshape(1, -1))
    w2p = jnp.zeros((hp, cp), w2.dtype).at[:hidden, :num_classes].set(w2)
    b2p = jnp.zeros((1, cp), b2.dtype).at[:, :num_classes].set(b2.reshape(1, -1))
    return (w1p, b1p, w2p, b2p), num_classes


def neural_net_forward(x, padded_params, num_classes, *, batch_tile=512):
    """Pallas forward pass equivalent to fc2(relu(fc1(x))) given pre-padded params."""
    w1p, b1p, w2p, b2p = padded_params
    batch, in_size = x.shape
    hp = w1p.shape[1]
    cp = w2p.shape[1]
    out_dtype = x.dtype

    # Advisory cost hint for XLA's scheduler around the custom call.
    cost = pl.CostEstimate(
        flops=2 * batch * (in_size * hp + hp * cp),
        transcendentals=0,
        bytes_accessed=(batch * (in_size + cp)) * x.dtype.itemsize
        + (w1p.size + b1p.size + w2p.size + b2p.size) * w1p.dtype.itemsize,
    )

    if batch <= 2 * _SUBLANE:
        # Tiny case: one VMEM-resident tile — no grid, no pipeline prologue/epilogue.
        out = pl.pallas_call(
            mlp_kernel,
            out_shape=jax.ShapeDtypeStruct((batch, cp), out_dtype),
            in_specs=[pl.BlockSpec(memory_space=pltpu.MemorySpace.VMEM)] * 5,
            out_specs=pl.BlockSpec(memory_space=pltpu.MemorySpace.VMEM),
            cost_estimate=cost,
        )(x, w1p, b1p, w2p, b2p)
        return out[:, :num_classes]

    # Batch tiling: big tiles (default 512 rows) to sit near the HBM roofline, but
    # capped so there are >= 2 grid steps (lets v7x shard the "parallel" axis over
    # its 2 TensorCores). Tile rows are a multiple of 8 (sublane).
    tm = min(batch_tile, _round_up(pl.cdiv(batch, 2), _SUBLANE))
    tm = max(tm, _SUBLANE)
    n_tiles = pl.cdiv(batch, tm)

    # Tight VMEM budget: double-buffered x/out tiles + (double-buffered) resident
    # weights, with 2x headroom; clamp to [8 MiB, 48 MiB] so the plan stays valid on
    # v7x's 64 MiB VMEM while leaving room for Mosaic internal scratch.
    elt = x.dtype.itemsize
    vmem_need = elt * (2 * tm * (in_size + cp)
                       + 2 * (in_size * hp + hp * cp + hp + cp))
    vmem_limit = min(48 * 1024 * 1024, max(8 * 1024 * 1024, 2 * vmem_need))

    out = pl.pallas_call(
        mlp_kernel,
        out_shape=jax.ShapeDtypeStruct((batch, cp), out_dtype),
        grid_spec=pltpu.PrefetchScalarGridSpec(
            num_scalar_prefetch=0,
            grid=(n_tiles,),
            in_specs=[
                # x: tiled over batch; last tile may be ragged (OOB rows read garbage,
                # their output rows are discarded — rows are independent, so exact).
                pl.BlockSpec((tm, in_size), lambda i: (i, 0)),
                pl.BlockSpec((in_size, hp), lambda i: (0, 0)),   # w1: resident
                pl.BlockSpec((1, hp),       lambda i: (0, 0)),   # b1: resident
                pl.BlockSpec((hp, cp),      lambda i: (0, 0)),   # w2: resident
                pl.BlockSpec((1, cp),       lambda i: (0, 0)),   # b2: resident
            ],
            out_specs=pl.BlockSpec((tm, cp), lambda i: (i, 0)),  # lane-dense output
        ),
        compiler_params=pltpu.CompilerParams(
            dimension_semantics=("parallel",),  # shards batch tiles across v7x's 2 TCs
            vmem_limit_bytes=vmem_limit,
        ),
        cost_estimate=cost,
    )(x, w1p, b1p, w2p, b2p)

    # Slice away class-lane padding only (no batch padding was materialized).
    return out[:, :num_classes]


def reference_forward(x, w1, b1, w2, b2):
    h = jnp.maximum(x @ w1 + b1, 0.0)
    return h @ w2 + b2


if __name__ == "__main__":
    # NeuralNet(_input_size=64, hidden_size=32, _num_classes=16), batch=8.
    batch, input_size, hidden_size, num_classes = 8, 64, 32, 16

    key = jax.random.PRNGKey(0)
    kx, k1, k2, k3, k4, kx2 = jax.random.split(key, 6)

    x = jax.random.normal(kx, (batch, input_size), dtype=jnp.float32)

    # Deterministic init (PyTorch-style uniform bound 1/sqrt(fan_in)).
    bound1 = 1.0 / (input_size ** 0.5)
    w1 = jax.random.uniform(k1, (input_size, hidden_size),
                            minval=-bound1, maxval=bound1, dtype=jnp.float32)
    b1 = jax.random.uniform(k2, (hidden_size,),
                            minval=-bound1, maxval=bound1, dtype=jnp.float32)

    bound2 = 1.0 / (hidden_size ** 0.5)
    w2 = jax.random.uniform(k3, (hidden_size, num_classes),
                            minval=-bound2, maxval=bound2, dtype=jnp.float32)
    b2 = jax.random.uniform(k4, (num_classes,),
                            minval=-bound2, maxval=bound2, dtype=jnp.float32)

    # Pad parameters ONCE; every forward call reuses the padded copies.
    padded, nc = pad_params(w1, b1, w2, b2)
    padded = tuple(jax.block_until_ready(p) for p in padded)

    # Small-batch path (gridless, single VMEM-resident tile).
    out = jax.block_until_ready(neural_net_forward(x, padded, nc))
    ref = reference_forward(x, w1, b1, w2, b2)
    assert out.shape == (batch, num_classes)
    assert jnp.allclose(out, ref, atol=1e-5, rtol=1e-5), "mismatch vs reference (small batch)"

    # Larger-batch path (ragged grid over batch, resident weights, no x copy).
    big_batch = 300  # not a multiple of the tile -> exercises ragged last tile + grid of 2
    xb = jax.random.normal(kx2, (big_batch, input_size), dtype=jnp.float32)
    out_b = jax.block_until_ready(neural_net_forward(xb, padded, nc))
    ref_b = reference_forward(xb, w1, b1, w2, b2)
    assert out_b.shape == (big_batch, num_classes)
    assert jnp.allclose(out_b, ref_b, atol=1e-5, rtol=1e-5), "mismatch vs reference (big batch)"

    print("KERNEL_OK")
</pallas_src>

<mosaic_0001>
module attributes {stable_mosaic.version = 11 : i64} {
  func.func @mlp_kernel(%arg0: memref<8x64xf32, #tpu.memory_space<vmem>>, %arg1: memref<64x128xf32, #tpu.memory_space<vmem>>, %arg2: memref<1x128xf32, #tpu.memory_space<vmem>>, %arg3: memref<128x128xf32, #tpu.memory_space<vmem>>, %arg4: memref<1x128xf32, #tpu.memory_space<vmem>>, %arg5: memref<8x128xf32, #tpu.memory_space<vmem>>) attributes {dimension_semantics = [], scalar_prefetch = 0 : i64, scratch_operands = 0 : i64, tpu.core_type = #tpu.core_type<tc>} {
    %c0 = arith.constant 0 : index
    %c0_0 = arith.constant 0 : index
    %0 = vector.load %arg0[%c0, %c0_0] : memref<8x64xf32, #tpu.memory_space<vmem>>, vector<8x64xf32>
    %c0_1 = arith.constant 0 : index
    %c0_2 = arith.constant 0 : index
    %1 = vector.load %arg1[%c0_1, %c0_2] : memref<64x128xf32, #tpu.memory_space<vmem>>, vector<64x128xf32>
    %cst = arith.constant dense<0.000000e+00> : vector<8x128xf32>
    %2 = tpu.matmul %0, %1, %cst {dimension_numbers = #tpu.dot_dimension_numbers<[1], [0], [0], [1], [0, 0, 1, 1], [], []>} : vector<8x64xf32>, vector<64x128xf32>, vector<8x128xf32> -> vector<8x128xf32>
    %c0_3 = arith.constant 0 : index
    %c0_4 = arith.constant 0 : index
    %3 = vector.load %arg2[%c0_3, %c0_4] : memref<1x128xf32, #tpu.memory_space<vmem>>, vector<1x128xf32>
    %4 = vector.broadcast %3 : vector<1x128xf32> to vector<8x128xf32>
    %5 = arith.addf %2, %4 : vector<8x128xf32>
    %cst_5 = arith.constant 0.000000e+00 : f32
    %6 = vector.broadcast %cst_5 : f32 to vector<8x128xf32>
    %7 = arith.maximumf %5, %6 : vector<8x128xf32>
    %c0_6 = arith.constant 0 : index
    %c0_7 = arith.constant 0 : index
    %8 = vector.load %arg3[%c0_6, %c0_7] : memref<128x128xf32, #tpu.memory_space<vmem>>, vector<128x128xf32>
    %cst_8 = arith.constant dense<0.000000e+00> : vector<8x128xf32>
    %9 = tpu.matmul %7, %8, %cst_8 {dimension_numbers = #tpu.dot_dimension_numbers<[1], [0], [0], [1], [0, 0, 1, 1], [], []>} : vector<8x128xf32>, vector<128x128xf32>, vector<8x128xf32> -> vector<8x128xf32>
    %c0_9 = arith.constant 0 : index
    %c0_10 = arith.constant 0 : index
    %10 = vector.load %arg4[%c0_9, %c0_10] : memref<1x128xf32, #tpu.memory_space<vmem>>, vector<1x128xf32>
    %11 = vector.broadcast %10 : vector<1x128xf32> to vector<8x128xf32>
    %12 = arith.addf %9, %11 : vector<8x128xf32>
    %c0_11 = arith.constant 0 : index
    %c0_12 = arith.constant 0 : index
    %13 = vector.load %arg5[%c0_11, %c0_12] : memref<8x128xf32, #tpu.memory_space<vmem>>, vector<8x128xf32>
    tpu.vector_store %arg5[%c0_11, %c0_12], %12 {strides = array<i32>} : memref<8x128xf32, #tpu.memory_space<vmem>>, vector<8x128xf32>,
    return
  }
}

</mosaic_0001>

<bundles_post_ra>
// kernel: tpu_custom_call.1
= control target key start
LH: loop header
LB: loop body
LE: loop exit
PB: predicated region body
PF: predicated region fallthrough
CT: control target
= control target key end

     0   :  { %10 = vsyncpa [#allocation3], 0  ;;  %s520_s0 = inlined_call_operand.hbm [shape: f32[8,64], index: 0, kind: input, shape index: {}]   ;;  %s521_s1 = inlined_call_operand.hbm [shape: f32[64,128], index: 1, kind: input, shape index: {}]   ;;  %s522_s2 = inlined_call_operand.vmem [shape: f32[1,128], index: 2, kind: input, shape index: {}]   ;;  %s523_s3 = inlined_call_operand.hbm [shape: f32[128,128], index: 3, kind: input, shape index: {}]   ;;  %s524_s4 = inlined_call_operand.vmem [shape: f32[1,128], index: 4, kind: input, shape index: {}]   ;;  %s525_s5 = inlined_call_operand.hbm [shape: f32[8,128], index: 5, kind: output, shape index: {}]  }
   0x1   :  { %11 = vsyncpa [#allocation6], 0 }
   0x2   :  { %12 = vsyncpa [#allocation4], 0  ;;  %s438_s18 = smov [#allocation5]  }
   0x3   :  { %s28_s19 = sshll.u32 %s438_s18, 4  ;;  %s29_s19 = int_to_ptr.vmem [resolvable:$true] %s28_s19 }
   0x4   :  { %s360_s20 = scalar_lea.vmem %s29_s19, 1024  ;;  %p365_p1 = scmp.lt.s32.totalorder %s29_s19, %s29_s19 }
   0x5   :  { %p361_p0 = scmp.ne.s32.totalorder %s29_s19, %s360_s20  ;;  %p366_p2 = scmp.lt.s32.totalorder %s360_s20, %s360_s20 }
   0x7   :  { %p367_p3 = por %p366_p2, %p365_p1 }
   0x9   :  { %p368_p4 = pnand %p367_p3, %p361_p0 }
   0xb   :  { %371 = shalt.err (!%p368_p4)
}
   0xc   :  { %s439_s21 = smov 128   ;;  %s440_s22 = smov 8  }
   0xd   :  { %34 = dma.hbm_to_vmem [thread:$0]  %s521_s1, 1024, %s29_s19, [#allocation6], %s439_s21, %s439_s21, %s440_s22  }
   0xe   :  { %s441_s25 = smov [#allocation2]   ;;  %s442_s27 = smov [#allocation7]  }
   0xf   :  { %s19_s26 = sshll.u32 %s441_s25, 4  ;;  %s42_s28 = sshll.u32 %s442_s27, 4  ;;  %s20_s26 = int_to_ptr.vmem [resolvable:$true] %s19_s26  ;;  %s43_s28 = int_to_ptr.vmem [resolvable:$true] %s42_s28 }
  0x10   :  { %s380_s29 = scalar_lea.vmem %s20_s26, 128  ;;  %p385_p6 = scmp.lt.s32.totalorder %s20_s26, %s20_s26 }
  0x11   :  { %p381_p5 = scmp.ne.s32.totalorder %s20_s26, %s380_s29  ;;  %p386_p7 = scmp.lt.s32.totalorder %s380_s29, %s380_s29 }
  0x13   :  { %p387_p8 = por %p386_p7, %p385_p6 }
  0x15   :  { %p388_p9 = pnand %p387_p8, %p381_p5 }
  0x17   :  { %391 = shalt.err (!%p388_p9)
}
  0x18   :  { %22 = dma.hbm_to_vmem [thread:$0]  %s520_s0, 128, %s20_s26, [#allocation3]  }
  0x19   :  { %s400_s7 = scalar_lea.vmem %s43_s28, 2048  ;;  %p405_p11 = scmp.lt.s32.totalorder %s43_s28, %s43_s28 }
  0x1a   :  { %p401_p10 = scmp.ne.s32.totalorder %s43_s28, %s400_s7  ;;  %p406_p12 = scmp.lt.s32.totalorder %s400_s7, %s400_s7 }
  0x1c   :  { %p407_p13 = por %p406_p12, %p405_p11 }
  0x1e   :  { %p408_p0 = pnand %p407_p13, %p401_p10 }
  0x20   :  { %411 = shalt.err (!%p408_p0)
}
  0x21   :  { %48 = dma.hbm_to_vmem [thread:$0]  %s523_s3, 2048, %s43_s28, [#allocation6], %s439_s21, %s439_s21, %s440_s22  }
  0x22   :  { %432 = dma.done.wait [#allocation3], 128  }
  0x23   :  { %433 = vsyncadd [#allocation3], 4294967168 }
  0x24   :  { %434 = dma.done.wait [#allocation6], 3072  }
  0x25   :  { %435 = vsyncadd [#allocation6], 4294964224  ;;  %v443_v0 = vmov 0.0   ;;  %vm444_vm0 = vmmov 0   ;;  %v68_v1 = vld [vmem:[#allocation5 + $0x38] sm:$0xff]  ;;  %v67_v2 = vld [vmem:[#allocation5 + $0x30] sm:$0xff] }
  0x26   :  { %290 = vmatprep.subr.mxu0 %v443_v0  ;;  %306 = vmatprep.mubr.msk.f32.mxu0 %vm444_vm0, %v443_v0  ;;  %v66_v3 = vld [vmem:[#allocation5 + $0x28] sm:$0xff]  ;;  %v166_v4 = vld [vmem:[#allocation7 + $0x78] sm:$0xff]  ;;  %v165_v5 = vld [vmem:[#allocation7 + $0x70] sm:$0xff]  ;;  %vm76_vm1 = vcmask 523264   ;;  %s445_s11 = smov [#allocation8]  }
  0x27   :  { %309 = vmatprep.subr.mxu1 %v443_v0  ;;  %341 = vmatprep.mubr.msk.f32.mxu1 %vm444_vm0, %v443_v0  ;;  %v65_v6 = vld [vmem:[#allocation5 + $0x20] sm:$0xff]  ;;  %v164_v7 = vld [vmem:[#allocation7 + $0x68] sm:$0xff]  ;;  %v64_v8 = vld [vmem:[#allocation5 + $0x18] sm:$0xff]  ;;  %s251_s12 = sshll.u32 %s445_s11, 4  ;;  %s252_s12 = int_to_ptr.vmem [resolvable:$true] %s251_s12 }
  0x28   :  { %291 = vmatpush3.msra.mxu0 %v68_v1  ;;  %310 = vmatpush3.msra.mxu1 %v166_v4  ;;  %v163_v9 = vld [vmem:[#allocation7 + $0x60] sm:$0xff]  ;;  %v63_v10 = vld [vmem:[#allocation5 + $0x10] sm:$0xff]  ;;  %v162_v11 = vld [vmem:[#allocation7 + $0x58] sm:$0xff]  ;;  %s412_s13 = scalar_lea.vmem %s252_s12, 128  ;;  %p417_p2 = scmp.lt.s32.totalorder %s252_s12, %s252_s12 }
  0x29   :  { %292 = vmatprep.subr.mxu0 %v443_v0  ;;  %311 = vmatprep.subr.mxu1 %v443_v0  ;;  %v62_v12 = vld [vmem:[#allocation5 + $0x8] sm:$0xff]  ;;  %v161_v13 = vld [vmem:[#allocation7 + $0x50] sm:$0xff]  ;;  %v61_v14 = vld [vmem:[#allocation5] sm:$0xff]  ;;  %p413_p1 = scmp.ne.s32.totalorder %s252_s12, %s412_s13  ;;  %p418_p3 = scmp.lt.s32.totalorder %s412_s13, %s412_s13 }
  0x2a   :  { %293 = vmatpush3.msra.mxu0 %v67_v2  ;;  %312 = vmatpush3.msra.mxu1 %v165_v5  ;;  %v60_v15 = vld [vmem:[#allocation2] sm:$0xff]  ;;  %v160_v16 = vld [vmem:[#allocation7 + $0x48] sm:$0xff]  ;;  %v159_v17 = vld [vmem:[#allocation7 + $0x40] sm:$0xff] }
  0x2b   :  { %294 = vmatprep.subr.mxu0 %v443_v0  ;;  %313 = vmatprep.subr.mxu1 %v443_v0  ;;  %v158_v18 = vld [vmem:[#allocation7 + $0x38] sm:$0xff]  ;;  %v157_v19 = vld [vmem:[#allocation7 + $0x30] sm:$0xff]  ;;  %v156_v20 = vld [vmem:[#allocation7 + $0x28] sm:$0xff]  ;;  %p419_p4 = por %p418_p3, %p417_p2 }
  0x2c   :  { %295 = vmatpush3.msra.mxu0 %v66_v3  ;;  %314 = vmatpush3.msra.mxu1 %v164_v7  ;;  %v155_v21 = vld [vmem:[#allocation7 + $0x20] sm:$0xff]  ;;  %v154_v22 = vld [vmem:[#allocation7 + $0x18] sm:$0xff]  ;;  %v153_v23 = vld [vmem:[#allocation7 + $0x10] sm:$0xff] }
  0x2d   :  { %296 = vmatprep.subr.mxu0 %v443_v0  ;;  %315 = vmatprep.subr.mxu1 %v443_v0  ;;  %v152_v24 = vld [vmem:[#allocation7 + $0x8] sm:$0xff]  ;;  %v151_v25 = vld [vmem:[#allocation7] sm:$0xff]  ;;  %v261_v26 = vld [vmem:[%s522_s2] ss:$0 sm:$0xff]  ;;  %p420_p5 = pnand %p419_p4, %p413_p1 }
  0x2e   :  { %297 = vmatpush3.msra.mxu0 %v65_v6  ;;  %316 = vmatpush3.msra.mxu1 %v163_v9  ;;  %v263_v31 = vld [vmem:[%s524_s4] ss:$0 sm:$0xff] }
  0x2f   :  { %298 = vmatprep.subr.mxu0 %v443_v0  ;;  %317 = vmatprep.subr.mxu1 %v443_v0 }
  0x30   :  { %299 = vmatpush3.msra.mxu0 %v64_v8  ;;  %318 = vmatpush3.msra.mxu1 %v162_v11 }
  0x31   :  { %300 = vmatprep.subr.mxu0 %v443_v0  ;;  %319 = vmatprep.subr.mxu1 %v443_v0 }
  0x32   :  { %301 = vmatpush3.msra.mxu0 %v63_v10  ;;  %320 = vmatpush3.msra.mxu1 %v161_v13 }
  0x33   :  { %302 = vmatprep.subr.mxu0 %v443_v0  ;;  %321 = vmatprep.subr.mxu1 %v443_v0 }
  0x34   :  { %303 = vmatpush3.msra.mxu0 %v62_v12  ;;  %322 = vmatpush3.msra.mxu1 %v160_v16 }
  0x35   :  { %304 = vmatprep.subr.mxu0 %v443_v0  ;;  %323 = vmatprep.subr.mxu1 %v443_v0 }
  0x36   :  { %305 = vmatpush3.msra.mxu0 %v61_v14  ;;  %324 = vmatpush3.msra.mxu1 %v159_v17 }
  0x37   :  { %307 = vmatmul.mubr.msk.f32.vlgmr.msra.gmra.mxu0 %vm76_vm1, %v60_v15  ;;  %325 = vmatprep.subr.mxu1 %v443_v0 }
  0x38   :  { %326 = vmatpush3.msra.mxu1 %v158_v18 }
  0x39   :  { %327 = vmatprep.subr.mxu1 %v443_v0 }
  0x3a   :  { %328 = vmatpush3.msra.mxu1 %v157_v19 }
  0x3b   :  { %329 = vmatprep.subr.mxu1 %v443_v0 }
  0x3c   :  { %330 = vmatpush3.msra.mxu1 %v156_v20 }
  0x3d   :  { %331 = vmatprep.subr.mxu1 %v443_v0 }
  0x3e   :  { %332 = vmatpush3.msra.mxu1 %v155_v21 }
  0x3f   :  { %333 = vmatprep.subr.mxu1 %v443_v0 }
  0x40   :  { %334 = vmatpush3.msra.mxu1 %v154_v22 }
  0x41   :  { %335 = vmatprep.subr.mxu1 %v443_v0 }
  0x42   :  { %336 = vmatpush3.msra.mxu1 %v153_v23 }
  0x43   :  { %337 = vmatprep.subr.mxu1 %v443_v0 }
  0x44   :  { %338 = vmatpush3.msra.mxu1 %v152_v24 }
  0x45   :  { %339 = vmatprep.subr.mxu1 %v443_v0 }
  0x46   :  { %340 = vmatpush3.msra.mxu1 %v151_v25 }
  0xf7   :  { %v146_v27 = vpop.f32.mrf.mxu0 }
  0xf8   :  { %v147_v28 = vadd.f32 %v261_v26, %v146_v27 }
  0xf9   :  { %v308_v29 = vpop.f32.mrf.mxu0 }
  0xfa   :  { %v150_v30 = vmax.f32 %v147_v28, 0.0 }
  0xfc   :  { %342 = vmatmul.mubr.f32.vlgmr.msra.gmra.mxu1 %v150_v30 }
 0x1bc   :  { %v240_v32 = vpop.f32.mrf.mxu1 }
 0x1bd   :  { %v241_v33 = vadd.f32 %v263_v31, %v240_v32 }
 0x1be   :  { %v343_v34 = vpop.f32.mrf.mxu1 }
 0x1bf   :  { %244 = vst [vmem:[#allocation8] sm:$0xff] %v241_v33 }
 0x1c0   :  { %423 = shalt.err (!%p420_p5)
}
 0x1c1   :  { %254 = dma.vmem_to_hbm [thread:$0]  %s252_s12, 128, %s525_s5, [#allocation4]  }
 0x1c2   :  { %436 = dma.done.wait [#allocation4], 128  }
 0x1c3   :  { %437 = vsyncadd [#allocation4], 4294967168 }
 0x1c4   :  { %258 = vsyncpa [#allocation3], 1 }
 0x1c5   :  { %259 = vsyncpa [#allocation6], 1 }
 0x1c6   :  { %260 = vsyncpa [#allocation4], 1 }

</bundles_post_ra>
